<compile_context>
chip_gen: v6e
topology: v6e:2x2x1
jax: 0.10.0
libtpu: 0.0.40
codegen_flags: <defaults>
</compile_context>

<pallas_src>
import math

import jax
import jax.numpy as jnp
from jax.experimental import pallas as pl
from jax.experimental.pallas import tpu as pltpu

K_IN = 28 * 28     # 784, true contraction dim (full-dim block, no padding)
N_PAD = 128        # lane-dense width for all hidden / output dims
N_OUT = 10         # true number of classes
TB_MAX = 2048      # max batch tile; fits v7x 64 MiB VMEM with f32 x double buffer


def mlp_kernel(x_ref, w1_ref, b1_ref, w2_ref, b2_ref, w3_ref, b3_ref, o_ref):
    """3x (Linear + ReLU) then log_softmax, one batch tile per grid step."""
    # In-kernel bf16 cast of the f32 input (VPU work, hidden under the DMA).
    x = x_ref[...].astype(jnp.bfloat16)                               # (TB, 784)

    # fc1 + relu (bf16 MXU, f32 accumulate, f32 epilogue)
    h1 = jnp.dot(x, w1_ref[...], preferred_element_type=jnp.float32)
    h1 = jnp.maximum(h1 + b1_ref[...], 0.0)                           # (TB, 128) f32
    # TODO(synk): nn.Dropout(0.2) is identity in eval mode; not applied here.

    # fc2 + relu
    h2 = jnp.dot(h1.astype(jnp.bfloat16), w2_ref[...],
                 preferred_element_type=jnp.float32)
    h2 = jnp.maximum(h2 + b2_ref[...], 0.0)                           # (TB, 128) f32

    # fc3 + relu (the PyTorch Net applies F.relu to fc3 before log_softmax)
    h3 = jnp.dot(h2.astype(jnp.bfloat16), w3_ref[...],
                 preferred_element_type=jnp.float32)
    h3 = jnp.maximum(h3 + b3_ref[...], 0.0)                           # (TB, 128) f32

    # log_softmax over the 10 real classes; padded lanes masked to -inf.
    lane = jax.lax.broadcasted_iota(jnp.int32, h3.shape, 1)
    valid = lane < N_OUT
    h3 = jnp.where(valid, h3, -jnp.inf)
    m = jnp.max(h3, axis=-1, keepdims=True)
    s = h3 - m
    lse = jnp.log(jnp.sum(jnp.exp(s), axis=-1, keepdims=True))
    o_ref[...] = jnp.where(valid, s - lse, 0.0)                       # lane-dense store


def _round_up(v, m):
    return ((v + m - 1) // m) * m


def net_forward(x_nchw, packed_params, *, tb=None):
    """x_nchw: (B, 1, 28, 28) float32 -> (B, 10) float32 log-probs."""
    w1, b1, w2, b2, w3, b3 = packed_params
    B = x_nchw.shape[0]

    # Reshape-only view of x (== torch.flatten(x, 1)); no cast, no K padding.
    x_flat = x_nchw.reshape(B, K_IN)

    if tb is None:
        if B <= 16:
            tb = _round_up(max(B, 8), 8)
        else:
            # >= 2 grid steps so v7x's two TensorCores both get work; cap at
            # TB_MAX so the f32 x double buffer + f32 temps fit v7x VMEM.
            tb = min(_round_up(pl.cdiv(B, 2), 8), TB_MAX)
    b_pad = pl.cdiv(B, tb) * tb
    if b_pad != B:
        x_flat = jnp.pad(x_flat, ((0, b_pad - B), (0, 0)))
    grid = (b_pad // tb,)

    const2d = lambda i: (0, 0)       # weights/biases: VMEM-resident (re-DMA elided)
    tiled = lambda i: (i, 0)         # x / out: tiled over batch

    # Advisory cost estimate reflecting the real (memory-bound) profile.
    flops = 2 * b_pad * (K_IN * N_PAD + N_PAD * N_PAD + N_PAD * N_PAD)
    bytes_accessed = (
        b_pad * K_IN * 4                                  # x (f32, read once)
        + (K_IN * N_PAD + 2 * N_PAD * N_PAD) * 2          # weights (bf16)
        + 3 * N_PAD * 4                                   # biases (f32)
        + b_pad * N_PAD * 4                               # output slab (f32)
    )

    out = pl.pallas_call(
        mlp_kernel,
        out_shape=jax.ShapeDtypeStruct((b_pad, N_PAD), jnp.float32),
        grid_spec=pltpu.PrefetchScalarGridSpec(
            num_scalar_prefetch=0,
            grid=grid,
            in_specs=[
                pl.BlockSpec((tb, K_IN), tiled),         # x (full 784 last dim)
                pl.BlockSpec((K_IN, N_PAD), const2d),    # w1
                pl.BlockSpec((1, N_PAD), const2d),       # b1
                pl.BlockSpec((N_PAD, N_PAD), const2d),   # w2
                pl.BlockSpec((1, N_PAD), const2d),       # b2
                pl.BlockSpec((N_PAD, N_PAD), const2d),   # w3
                pl.BlockSpec((1, N_PAD), const2d),       # b3
            ],
            out_specs=pl.BlockSpec((tb, N_PAD), tiled),
        ),
        compiler_params=pltpu.CompilerParams(
            dimension_semantics=("parallel",),
            vmem_limit_bytes=48 * 1024 * 1024),          # headroom under v7x 64 MiB
        cost_estimate=pl.CostEstimate(
            flops=flops,
            transcendentals=b_pad * (N_PAD + 1),
            bytes_accessed=bytes_accessed),
    )(x_flat, w1, b1, w2, b2, w3, b3)

    # TODO(synk): downstream consumers should fuse this [:, :10] slice; as a
    # standalone script we materialize it here.
    return out[:B, :N_OUT]


def init_params(key):
    """nn.Linear-style init. Raw (unpadded) params, weights as (in, out) = W^T."""
    dims = [(28 * 28, 128), (128, 64), (64, 10)]
    params = []
    for (fan_in, fan_out) in dims:
        key, kw, kb = jax.random.split(key, 3)
        bound = 1.0 / math.sqrt(fan_in)
        w = jax.random.uniform(kw, (fan_in, fan_out), jnp.float32, -bound, bound)
        b = jax.random.uniform(kb, (1, fan_out), jnp.float32, -bound, bound)
        params += [w, b]
    return tuple(params)


def pack_params(raw_params):
    """Zero-pad hidden/output dims to 128 lanes, cast weights to bf16."""
    w1, b1, w2, b2, w3, b3 = raw_params
    w1p = w1.astype(jnp.bfloat16)                                        # (784, 128)
    b1p = b1.astype(jnp.float32)                                         # (1, 128)
    w2p = jnp.zeros((N_PAD, N_PAD), jnp.float32).at[:, :64].set(w2).astype(jnp.bfloat16)
    b2p = jnp.zeros((1, N_PAD), jnp.float32).at[:, :64].set(b2)
    w3p = jnp.zeros((N_PAD, N_PAD), jnp.float32).at[:64, :N_OUT].set(w3).astype(jnp.bfloat16)
    b3p = jnp.zeros((1, N_PAD), jnp.float32).at[:, :N_OUT].set(b3)
    return (w1p, b1p, w2p, b2p, w3p, b3p)


def reference(x_nchw, raw_params):
    """Plain-JAX reference mimicking the kernel's bf16-input / f32-accumulate math."""
    w1, b1, w2, b2, w3, b3 = raw_params
    bf = lambda a: a.astype(jnp.bfloat16).astype(jnp.float32)
    B = x_nchw.shape[0]
    h = bf(x_nchw.reshape(B, -1))
    h = jnp.maximum(h @ bf(w1) + b1, 0.0)
    h = jnp.maximum(bf(h) @ bf(w2) + b2, 0.0)
    h = jnp.maximum(bf(h) @ bf(w3) + b3, 0.0)
    s = h - jnp.max(h, axis=-1, keepdims=True)
    return s - jnp.log(jnp.sum(jnp.exp(s), axis=-1, keepdims=True))


if __name__ == "__main__":
    key = jax.random.PRNGKey(0)
    kx, kp = jax.random.split(key)

    B = 8
    x = jax.random.normal(kx, (B, 1, 28, 28), jnp.float32)            # NCHW, like MNIST
    raw_params = init_params(kp)
    packed = pack_params(raw_params)

    out = net_forward(x, packed)
    jax.block_until_ready(out)

    ref = reference(x, raw_params)
    assert out.shape == (B, 10)
    assert bool(jnp.all(jnp.isfinite(out))), "non-finite output"
    assert jnp.allclose(out, ref, atol=2e-2), "mismatch vs reference"
    assert bool(jnp.all(jnp.argmax(out, -1) == jnp.argmax(ref, -1))), "argmax mismatch"

    print("KERNEL_OK")
</pallas_src>

<mosaic_0001>
module attributes {stable_mosaic.version = 11 : i64} {
  func.func @mlp_kernel(%arg0: i32, %arg1: memref<8x784xf32, #tpu.memory_space<vmem>>, %arg2: memref<784x128xbf16, #tpu.memory_space<vmem>>, %arg3: memref<1x128xf32, #tpu.memory_space<vmem>>, %arg4: memref<128x128xbf16, #tpu.memory_space<vmem>>, %arg5: memref<1x128xf32, #tpu.memory_space<vmem>>, %arg6: memref<128x128xbf16, #tpu.memory_space<vmem>>, %arg7: memref<1x128xf32, #tpu.memory_space<vmem>>, %arg8: memref<8x128xf32, #tpu.memory_space<vmem>>) attributes {dimension_semantics = [#tpu.dimension_semantics<parallel>], iteration_bounds = array<i64: 1>, scalar_prefetch = 0 : i64, scratch_operands = 0 : i64, tpu.core_type = #tpu.core_type<tc>, window_params = [{transform_indices = @transform_0, window_bounds = array<i64: 8, 784>}, {pipeline_mode = #tpu.pipeline_mode<synchronous>, transform_indices = @transform_1, window_bounds = array<i64: 784, 128>}, {pipeline_mode = #tpu.pipeline_mode<synchronous>, transform_indices = @transform_2, window_bounds = array<i64: 1, 128>}, {pipeline_mode = #tpu.pipeline_mode<synchronous>, transform_indices = @transform_3, window_bounds = array<i64: 128, 128>}, {pipeline_mode = #tpu.pipeline_mode<synchronous>, transform_indices = @transform_4, window_bounds = array<i64: 1, 128>}, {pipeline_mode = #tpu.pipeline_mode<synchronous>, transform_indices = @transform_5, window_bounds = array<i64: 128, 128>}, {pipeline_mode = #tpu.pipeline_mode<synchronous>, transform_indices = @transform_6, window_bounds = array<i64: 1, 128>}, {transform_indices = @transform_7, window_bounds = array<i64: 8, 128>}]} {
    %c0 = arith.constant 0 : index
    %c0_0 = arith.constant 0 : index
    %0 = vector.load %arg1[%c0, %c0_0] : memref<8x784xf32, #tpu.memory_space<vmem>>, vector<8x784xf32>
    %1 = arith.truncf %0 : vector<8x784xf32> to vector<8x784xbf16>
    %c0_1 = arith.constant 0 : index
    %c0_2 = arith.constant 0 : index
    %2 = vector.load %arg2[%c0_1, %c0_2] : memref<784x128xbf16, #tpu.memory_space<vmem>>, vector<784x128xbf16>
    %cst = arith.constant dense<0.000000e+00> : vector<8x128xf32>
    %3 = tpu.matmul %1, %2, %cst {dimension_numbers = #tpu.dot_dimension_numbers<[1], [0], [0], [1], [0, 0, 1, 1], [], []>} : vector<8x784xbf16>, vector<784x128xbf16>, vector<8x128xf32> -> vector<8x128xf32>
    %c0_3 = arith.constant 0 : index
    %c0_4 = arith.constant 0 : index
    %4 = vector.load %arg3[%c0_3, %c0_4] : memref<1x128xf32, #tpu.memory_space<vmem>>, vector<1x128xf32>
    %5 = vector.broadcast %4 : vector<1x128xf32> to vector<8x128xf32>
    %6 = arith.addf %3, %5 : vector<8x128xf32>
    %cst_5 = arith.constant 0.000000e+00 : f32
    %7 = vector.broadcast %cst_5 : f32 to vector<8x128xf32>
    %8 = arith.maximumf %6, %7 : vector<8x128xf32>
    %9 = arith.truncf %8 : vector<8x128xf32> to vector<8x128xbf16>
    %c0_6 = arith.constant 0 : index
    %c0_7 = arith.constant 0 : index
    %10 = vector.load %arg4[%c0_6, %c0_7] : memref<128x128xbf16, #tpu.memory_space<vmem>>, vector<128x128xbf16>
    %cst_8 = arith.constant dense<0.000000e+00> : vector<8x128xf32>
    %11 = tpu.matmul %9, %10, %cst_8 {dimension_numbers = #tpu.dot_dimension_numbers<[1], [0], [0], [1], [0, 0, 1, 1], [], []>} : vector<8x128xbf16>, vector<128x128xbf16>, vector<8x128xf32> -> vector<8x128xf32>
    %c0_9 = arith.constant 0 : index
    %c0_10 = arith.constant 0 : index
    %12 = vector.load %arg5[%c0_9, %c0_10] : memref<1x128xf32, #tpu.memory_space<vmem>>, vector<1x128xf32>
    %13 = vector.broadcast %12 : vector<1x128xf32> to vector<8x128xf32>
    %14 = arith.addf %11, %13 : vector<8x128xf32>
    %cst_11 = arith.constant 0.000000e+00 : f32
    %15 = vector.broadcast %cst_11 : f32 to vector<8x128xf32>
    %16 = arith.maximumf %14, %15 : vector<8x128xf32>
    %17 = arith.truncf %16 : vector<8x128xf32> to vector<8x128xbf16>
    %c0_12 = arith.constant 0 : index
    %c0_13 = arith.constant 0 : index
    %18 = vector.load %arg6[%c0_12, %c0_13] : memref<128x128xbf16, #tpu.memory_space<vmem>>, vector<128x128xbf16>
    %cst_14 = arith.constant dense<0.000000e+00> : vector<8x128xf32>
    %19 = tpu.matmul %17, %18, %cst_14 {dimension_numbers = #tpu.dot_dimension_numbers<[1], [0], [0], [1], [0, 0, 1, 1], [], []>} : vector<8x128xbf16>, vector<128x128xbf16>, vector<8x128xf32> -> vector<8x128xf32>
    %c0_15 = arith.constant 0 : index
    %c0_16 = arith.constant 0 : index
    %20 = vector.load %arg7[%c0_15, %c0_16] : memref<1x128xf32, #tpu.memory_space<vmem>>, vector<1x128xf32>
    %21 = vector.broadcast %20 : vector<1x128xf32> to vector<8x128xf32>
    %22 = arith.addf %19, %21 : vector<8x128xf32>
    %cst_17 = arith.constant 0.000000e+00 : f32
    %23 = vector.broadcast %cst_17 : f32 to vector<8x128xf32>
    %24 = arith.maximumf %22, %23 : vector<8x128xf32>
    %25 = tpu.iota {dimensions = array<i32: 1>} : vector<8x128xi32>
    %c10_i32 = arith.constant 10 : i32
    %26 = vector.broadcast %c10_i32 : i32 to vector<8x128xi32>
    %27 = arith.cmpi slt, %25, %26 : vector<8x128xi32>
    %cst_18 = arith.constant 0xFF800000 : f32
    %28 = vector.broadcast %cst_18 : f32 to vector<8x128xf32>
    %29 = arith.select %27, %24, %28 : vector<8x128xi1>, vector<8x128xf32>
    %cst_19 = arith.constant dense<0xFF800000> : vector<8xf32>
    %30 = vector.multi_reduction <maximumf>, %29, %cst_19 [1] : vector<8x128xf32> to vector<8xf32>
    %31 = vector.shape_cast %30 : vector<8xf32> to vector<8x1xf32>
    %32 = vector.broadcast %31 : vector<8x1xf32> to vector<8x128xf32>
    %33 = arith.subf %29, %32 : vector<8x128xf32>
    %34 = math.exp %33 : vector<8x128xf32>
    %cst_20 = arith.constant dense<0.000000e+00> : vector<8xf32>
    %35 = vector.multi_reduction <add>, %34, %cst_20 [1] : vector<8x128xf32> to vector<8xf32>
    %36 = vector.shape_cast %35 : vector<8xf32> to vector<8x1xf32>
    %37 = math.log %36 : vector<8x1xf32>
    %38 = vector.broadcast %37 : vector<8x1xf32> to vector<8x128xf32>
    %39 = arith.subf %33, %38 : vector<8x128xf32>
    %cst_21 = arith.constant 0.000000e+00 : f32
    %40 = vector.broadcast %cst_21 : f32 to vector<8x128xf32>
    %41 = arith.select %27, %39, %40 : vector<8x128xi1>, vector<8x128xf32>
    %c0_22 = arith.constant 0 : index
    %c0_23 = arith.constant 0 : index
    %42 = vector.load %arg8[%c0_22, %c0_23] : memref<8x128xf32, #tpu.memory_space<vmem>>, vector<8x128xf32>
    tpu.vector_store %arg8[%c0_22, %c0_23], %41 {strides = array<i32>} : memref<8x128xf32, #tpu.memory_space<vmem>>, vector<8x128xf32>,
    return
  }
  func.func @transform_0(%arg0: i32) -> (i32, i32) {
    %c0_i32 = arith.constant 0 : i32
    %c0_i32_0 = arith.constant 0 : i32
    return %arg0, %c0_i32 : i32, i32
  }
  func.func @transform_1(%arg0: i32) -> (i32, i32) {
    %c0_i32 = arith.constant 0 : i32
    %c0_i32_0 = arith.constant 0 : i32
    %c0_i32_1 = arith.constant 0 : i32
    return %c0_i32, %c0_i32_0 : i32, i32
  }
  func.func @transform_2(%arg0: i32) -> (i32, i32) {
    %c0_i32 = arith.constant 0 : i32
    %c0_i32_0 = arith.constant 0 : i32
    %c0_i32_1 = arith.constant 0 : i32
    return %c0_i32, %c0_i32_0 : i32, i32
  }
  func.func @transform_3(%arg0: i32) -> (i32, i32) {
    %c0_i32 = arith.constant 0 : i32
    %c0_i32_0 = arith.constant 0 : i32
    %c0_i32_1 = arith.constant 0 : i32
    return %c0_i32, %c0_i32_0 : i32, i32
  }
  func.func @transform_4(%arg0: i32) -> (i32, i32) {
    %c0_i32 = arith.constant 0 : i32
    %c0_i32_0 = arith.constant 0 : i32
    %c0_i32_1 = arith.constant 0 : i32
    return %c0_i32, %c0_i32_0 : i32, i32
  }
  func.func @transform_5(%arg0: i32) -> (i32, i32) {
    %c0_i32 = arith.constant 0 : i32
    %c0_i32_0 = arith.constant 0 : i32
    %c0_i32_1 = arith.constant 0 : i32
    return %c0_i32, %c0_i32_0 : i32, i32
  }
  func.func @transform_6(%arg0: i32) -> (i32, i32) {
    %c0_i32 = arith.constant 0 : i32
    %c0_i32_0 = arith.constant 0 : i32
    %c0_i32_1 = arith.constant 0 : i32
    return %c0_i32, %c0_i32_0 : i32, i32
  }
  func.func @transform_7(%arg0: i32) -> (i32, i32) {
    %c0_i32 = arith.constant 0 : i32
    %c0_i32_0 = arith.constant 0 : i32
    return %arg0, %c0_i32 : i32, i32
  }
}

</mosaic_0001>

<bundles_post_ra>
// kernel: tpu_custom_call.1
= control target key start
LH: loop header
LB: loop body
LE: loop exit
PB: predicated region body
PF: predicated region fallthrough
CT: control target
= control target key end

     0   :  { %12 = vsyncpa [#allocation3], 0  ;;  %s1412_s0 = inlined_call_operand.hbm [shape: f32[8,784], index: 0, kind: input, shape index: {}]   ;;  %s1413_s1 = inlined_call_operand.hbm [shape: bf16[784,128], index: 1, kind: input, shape index: {}]   ;;  %s1414_s2 = inlined_call_operand.vmem [shape: f32[1,128], index: 2, kind: input, shape index: {}]   ;;  %s1415_s3 = inlined_call_operand.hbm [shape: bf16[128,128], index: 3, kind: input, shape index: {}]   ;;  %s1416_s4 = inlined_call_operand.vmem [shape: f32[1,128], index: 4, kind: input, shape index: {}]   ;;  %s1417_s5 = inlined_call_operand.hbm [shape: bf16[128,128], index: 5, kind: input, shape index: {}]   ;;  %s1418_s6 = inlined_call_operand.vmem [shape: f32[1,128], index: 6, kind: input, shape index: {}]   ;;  %s1419_s7 = inlined_call_operand.hbm [shape: f32[8,128], index: 7, kind: output, shape index: {}]  }
   0x1   :  { %13 = vsyncpa [#allocation6], 0 }
   0x2   :  { %14 = vsyncpa [#allocation9], 0 }
   0x3   :  { %15 = vsyncpa [#allocation4], 0  ;;  %s1305_s24 = smov [#allocation5]  }
   0x4   :  { %s31_s25 = sshll.u32 %s1305_s24, 4  ;;  %s32_s25 = int_to_ptr.vmem [resolvable:$true] %s31_s25 }
   0x5   :  { %s1205_s26 = scalar_lea.vmem %s32_s25, 6272  ;;  %p1210_p1 = scmp.lt.s32.totalorder %s32_s25, %s32_s25 }
   0x6   :  { %p1206_p0 = scmp.ne.s32.totalorder %s32_s25, %s1205_s26  ;;  %p1211_p2 = scmp.lt.s32.totalorder %s1205_s26, %s1205_s26 }
   0x8   :  { %p1212_p3 = por %p1211_p2, %p1210_p1 }
   0xa   :  { %p1213_p4 = pnand %p1212_p3, %p1206_p0 }
   0xc   :  { %1216 = shalt.err (!%p1213_p4)
}
   0xd   :  { %s1306_s27 = smov 64   ;;  %s1307_s28 = smov 4  }
   0xe   :  { %37 = dma.hbm_to_vmem [thread:$0]  %s1413_s1, 6272, %s32_s25, [#allocation6], %s1306_s27, %s1306_s27, %s1307_s28  }
   0xf   :  { %s1308_s8 = smov [#allocation2]   ;;  %s1309_s10 = smov [#allocation7]  }
  0x10   :  { %s22_s9 = sshll.u32 %s1308_s8, 4  ;;  %s45_s11 = sshll.u32 %s1309_s10, 4  ;;  %s23_s9 = int_to_ptr.vmem [resolvable:$true] %s22_s9  ;;  %s46_s11 = int_to_ptr.vmem [resolvable:$true] %s45_s11 }
  0x11   :  { %s1225_s12 = scalar_lea.vmem %s23_s9, 896  ;;  %p1230_p6 = scmp.lt.s32.totalorder %s23_s9, %s23_s9 }
  0x12   :  { %p1226_p5 = scmp.ne.s32.totalorder %s23_s9, %s1225_s12  ;;  %p1231_p7 = scmp.lt.s32.totalorder %s1225_s12, %s1225_s12 }
  0x14   :  { %p1232_p8 = por %p1231_p7, %p1230_p6 }
  0x16   :  { %p1233_p9 = pnand %p1232_p8, %p1226_p5 }
  0x18   :  { %1236 = shalt.err (!%p1233_p9)
}
  0x19   :  { %25 = dma.hbm_to_vmem [thread:$0]  %s1412_s0, 896, %s23_s9, [#allocation3]  }
  0x1a   :  { %s1245_s15 = scalar_lea.vmem %s46_s11, 1024  ;;  %p1250_p11 = scmp.lt.s32.totalorder %s46_s11, %s46_s11 }
  0x1b   :  { %p1246_p10 = scmp.ne.s32.totalorder %s46_s11, %s1245_s15  ;;  %p1251_p12 = scmp.lt.s32.totalorder %s1245_s15, %s1245_s15 }
  0x1d   :  { %p1252_p13 = por %p1251_p12, %p1250_p11 }
  0x1f   :  { %p1253_p0 = pnand %p1252_p13, %p1246_p10 }
  0x21   :  { %1256 = shalt.err (!%p1253_p0)
}
  0x22   :  { %51 = dma.hbm_to_vmem [thread:$0]  %s1415_s3, 1024, %s46_s11, [#allocation6], %s1306_s27, %s1306_s27, %s1307_s28  }
  0x23   :  { %s1310_s17 = smov [#allocation8]  }
  0x24   :  { %s59_s18 = sshll.u32 %s1310_s17, 4  ;;  %s60_s18 = int_to_ptr.vmem [resolvable:$true] %s59_s18 }
  0x25   :  { %s1265_s19 = scalar_lea.vmem %s60_s18, 1024  ;;  %p1270_p2 = scmp.lt.s32.totalorder %s60_s18, %s60_s18 }
  0x26   :  { %p1266_p1 = scmp.ne.s32.totalorder %s60_s18, %s1265_s19  ;;  %p1271_p3 = scmp.lt.s32.totalorder %s1265_s19, %s1265_s19 }
  0x28   :  { %p1272_p4 = por %p1271_p3, %p1270_p2 }
  0x2a   :  { %p1273_p5 = pnand %p1272_p4, %p1266_p1 }
  0x2c   :  { %1276 = shalt.err (!%p1273_p5)
}
  0x2d   :  { %65 = dma.hbm_to_vmem [thread:$0]  %s1417_s5, 1024, %s60_s18, [#allocation9], %s1306_s27, %s1306_s27, %s1307_s28  }
  0x2e   :  { %1297 = dma.done.wait [#allocation3], 896  }
  0x2f   :  { %1298 = vsyncadd [#allocation3], 4294966400 }
  0x30   :  { %1299 = dma.done.wait [#allocation6], 7296  }
  0x31   :  { %1300 = vsyncadd [#allocation6], 4294960000 }
  0x32   :  { %1301 = dma.done.wait [#allocation9], 1024  }
  0x33   :  { %1302 = vsyncadd [#allocation9], 4294966272  ;;  %v1128_v0 = vld [vmem:[#allocation5 + $0x78] sm:$0xff]   ;;  %v1132_v4 = vld [vmem:[#allocation5 + $0x70] sm:$0xff]   ;;  %v1311_v44 = vmov 0.0   ;;  %vm1312_vm0 = vmmov 0  }
  0x34   :  { %v1129_v1 = vld [vmem:[#allocation5 + $0x38] sm:$0xff]   ;;  %987 = vmatprep.subr.bf16.mxu0 %v1128_v0  ;;  %v1133_v5 = vld [vmem:[#allocation5 + $0x30] sm:$0xff]   ;;  %v1136_v8 = vld [vmem:[#allocation5 + $0x68] sm:$0xff]   ;;  %vm494_vm1 = vcmask 130048  }
  0x35   :  { %v1130_v2 = vld [vmem:[#allocation5 + $0xf8] sm:$0xff]   ;;  %988 = vmatpush3.bf16.msra.mxu0 %v1129_v1  ;;  %v1134_v6 = vld [vmem:[#allocation5 + $0xf0] sm:$0xff]   ;;  %v1137_v9 = vld [vmem:[#allocation5 + $0x28] sm:$0xff]  }
  0x36   :  { %v1131_v3 = vld [vmem:[#allocation5 + $0xb8] sm:$0xff]   ;;  %1009 = vmatprep.subr.bf16.mxu1 %v1130_v2  ;;  %989 = vmatprep.subr.bf16.mxu0 %v1132_v4  ;;  %v1135_v7 = vld [vmem:[#allocation5 + $0xb0] sm:$0xff]   ;;  %v1138_v10 = vld [vmem:[#allocation5 + $0xe8] sm:$0xff]  }
  0x37   :  { %1010 = vmatpush3.bf16.msra.mxu1 %v1131_v3  ;;  %v1139_v11 = vld [vmem:[#allocation5 + $0xa8] sm:$0xff]   ;;  %v1140_v12 = vld [vmem:[#allocation5 + $0x60] sm:$0xff]   ;;  %v1144_v16 = vld [vmem:[#allocation5 + $0x58] sm:$0xff]  }
  0x38   :  { %1011 = vmatprep.subr.bf16.mxu1 %v1134_v6  ;;  %v1141_v13 = vld [vmem:[#allocation5 + $0x20] sm:$0xff]   ;;  %v1145_v17 = vld [vmem:[#allocation5 + $0x18] sm:$0xff]   ;;  %v1148_v20 = vld [vmem:[#allocation5 + $0x50] sm:$0xff]  }
  0x39   :  { %990 = vmatpush3.bf16.msra.mxu0 %v1133_v5  ;;  %v1142_v14 = vld [vmem:[#allocation5 + $0xe0] sm:$0xff]   ;;  %v1146_v18 = vld [vmem:[#allocation5 + $0xd8] sm:$0xff]   ;;  %v1149_v21 = vld [vmem:[#allocation5 + $0x10] sm:$0xff]  }
  0x3a   :  { %991 = vmatprep.subr.bf16.mxu0 %v1136_v8  ;;  %v1143_v15 = vld [vmem:[#allocation5 + $0xa0] sm:$0xff]   ;;  %v1147_v19 = vld [vmem:[#allocation5 + $0x98] sm:$0xff]   ;;  %v1150_v22 = vld [vmem:[#allocation5 + $0xd0] sm:$0xff]  }
  0x3b   :  { %1012 = vmatpush3.bf16.msra.mxu1 %v1135_v7  ;;  %v1151_v23 = vld [vmem:[#allocation5 + $0x90] sm:$0xff]   ;;  %v1152_v24 = vld [vmem:[#allocation5 + $0x48] sm:$0xff]   ;;  %v1156_v28 = vld [vmem:[#allocation5 + $0x40] sm:$0xff]  }
  0x3c   :  { %1013 = vmatprep.subr.bf16.mxu1 %v1138_v10  ;;  %v1153_v25 = vld [vmem:[#allocation5 + $0x8] sm:$0xff]   ;;  %v1157_v29 = vld [vmem:[#allocation5] sm:$0xff]   ;;  %v82_v31 = vld [vmem:[#allocation2 + $0x8] sm:$0xff] }
  0x3d   :  { %992 = vmatpush3.bf16.msra.mxu0 %v1137_v9  ;;  %v1154_v26 = vld [vmem:[#allocation5 + $0xc8] sm:$0xff]   ;;  %v1158_v30 = vld [vmem:[#allocation5 + $0xc0] sm:$0xff]   ;;  %v89_v32 = vpack.c.bf16 %v82_v31, %v82_v31  ;;  %v1160_v36 = vld [vmem:[#allocation5 + $0x178] sm:$0xff]  }
  0x3e   :  { %993 = vmatprep.subr.bf16.mxu0 %v1140_v12  ;;  %v1155_v27 = vld [vmem:[#allocation5 + $0x88] sm:$0xff]   ;;  %v1159_v33 = vld [vmem:[#allocation5 + $0x80] sm:$0xff]   ;;  %v1161_v39 = vld [vmem:[#allocation5 + $0x138] sm:$0xff]  }
  0x3f   :  { %1014 = vmatpush3.bf16.msra.mxu1 %v1139_v11  ;;  %v81_v34 = vld [vmem:[#allocation2] sm:$0xff]  ;;  %v84_v37 = vld [vmem:[#allocation2 + $0x18] sm:$0xff]  ;;  %530 = vmatprep.mubr.bf16.mxu0 %v89_v32  ;;  %v83_v40 = vld [vmem:[#allocation2 + $0x10] sm:$0xff] }
  0x40   :  { %1015 = vmatprep.subr.bf16.mxu1 %v1142_v14  ;;  %v88_v35 = vpack.c.bf16 %v81_v34, %v81_v34  ;;  %v91_v38 = vpack.c.bf16 %v84_v37, %v84_v37  ;;  %v90_v41 = vpack.c.bf16 %v83_v40, %v83_v40  ;;  %v1162_v42 = vld [vmem:[#allocation5 + $0x170] sm:$0xff]   ;;  %v1164_v45 = vld [vmem:[#allocation5 + $0x168] sm:$0xff]   ;;  %v1166_v47 = vld [vmem:[#allocation5 + $0x160] sm:$0xff]  }
  0x41   :  { %994 = vmatpush3.bf16.msra.mxu0 %v1141_v13  ;;  %v1163_v43 = vld [vmem:[#allocation5 + $0x130] sm:$0xff]   ;;  %v1165_v46 = vld [vmem:[#allocation5 + $0x128] sm:$0xff]   ;;  %v1167_v48 = vld [vmem:[#allocation5 + $0x120] sm:$0xff]  }
  0x42   :  { %995 = vmatprep.subr.bf16.mxu0 %v1144_v16  ;;  %570 = vmatprep.mubr.bf16.mxu1 %v91_v38  ;;  %v1168_v49 = vld [vmem:[#allocation5 + $0x158] sm:$0xff]   ;;  %v1170_v51 = vld [vmem:[#allocation5 + $0x150] sm:$0xff]   ;;  %v1176_v53 = vld [vmem:[#allocation5 + $0x180] sm:$0xff]  }
  0x43   :  { %1016 = vmatpush3.bf16.msra.mxu1 %v1143_v15  ;;  %v1169_v50 = vld [vmem:[#allocation5 + $0x118] sm:$0xff]   ;;  %v1171_v52 = vld [vmem:[#allocation5 + $0x110] sm:$0xff]   ;;  %v1172_v55 = vld [vmem:[#allocation5 + $0x148] sm:$0xff]  }
  0x44   :  { %1017 = vmatprep.subr.bf16.mxu1 %v1146_v18  ;;  %v86_v54 = vld [vmem:[#allocation2 + $0x28] sm:$0xff]  ;;  %v87_v57 = vld [vmem:[#allocation2 + $0x30] sm:$0xff]  ;;  %v1173_v59 = vld [vmem:[#allocation5 + $0x108] sm:$0xff]  }
  0x45   :  { %996 = vmatpush3.bf16.msra.mxu0 %v1145_v17  ;;  %v93_v56 = vpack.c.bf16 %v86_v54, %v86_v54  ;;  %v94_v58 = vpack.c.bf16 %v87_v57, %v87_v57  ;;  %v1174_v60 = vld [vmem:[#allocation5 + $0x140] sm:$0xff]   ;;  %v85_v62 = vld [vmem:[#allocation2 + $0x20] sm:$0xff]  ;;  %v1178_v1 = vld [vmem:[#allocation7 + $0x30] sm:$0xff]  }
  0x46   :  { %997 = vmatprep.subr.bf16.mxu0 %v1148_v20  ;;  %v1175_v61 = vld [vmem:[#allocation5 + $0x100] sm:$0xff]   ;;  %v92_v63 = vpack.c.bf16 %v85_v62, %v85_v62  ;;  %v1179_v2 = vld [vmem:[#allocation7 + $0x28] sm:$0xff]   ;;  %v1180_v3 = vld [vmem:[#allocation7 + $0x20] sm:$0xff]  }
  0x47   :  { %1018 = vmatpush3.bf16.msra.mxu1 %v1147_v19  ;;  %v1177_v0 = vld [vmem:[#allocation7 + $0x38] sm:$0xff]   ;;  %v1182_v5 = vld [vmem:[#allocation7 + $0x10] sm:$0xff]   ;;  %v1183_v6 = vld [vmem:[#allocation7 + $0x8] sm:$0xff]  }
  0x48   :  { %1019 = vmatprep.subr.bf16.mxu1 %v1150_v22  ;;  %v1181_v4 = vld [vmem:[#allocation7 + $0x18] sm:$0xff]   ;;  %v1184_v7 = vld [vmem:[#allocation7] sm:$0xff]   ;;  %v1186_v9 = vld [vmem:[#allocation8 + $0x30] sm:$0xff]  }
  0x49   :  { %998 = vmatpush3.bf16.msra.mxu0 %v1149_v21  ;;  %v1185_v8 = vld [vmem:[#allocation8 + $0x38] sm:$0xff]   ;;  %v1187_v10 = vld [vmem:[#allocation8 + $0x28] sm:$0xff]   ;;  %v1188_v11 = vld [vmem:[#allocation8 + $0x20] sm:$0xff]  }
  0x4a   :  { %999 = vmatprep.subr.bf16.mxu0 %v1152_v24  ;;  %v1189_v12 = vld [vmem:[#allocation8 + $0x18] sm:$0xff]   ;;  %v1190_v13 = vld [vmem:[#allocation8 + $0x10] sm:$0xff]   ;;  %v1191_v40 = vld [vmem:[#allocation8 + $0x8] sm:$0xff]  }
  0x4b   :  { %1020 = vmatpush3.bf16.msra.mxu1 %v1151_v23 }
  0x4c   :  { %1021 = vmatprep.subr.bf16.mxu1 %v1154_v26 }
  0x4d   :  { %1000 = vmatpush3.bf16.msra.mxu0 %v1153_v25 }
  0x4e   :  { %1001 = vmatprep.subr.bf16.mxu0 %v1156_v28 }
  0x4f   :  { %1022 = vmatpush3.bf16.msra.mxu1 %v1155_v27  ;;  %v918_v27 = vld [vmem:[%s1414_s2] ss:$0 sm:$0xff] }
  0x50   :  { %1023 = vmatprep.subr.bf16.mxu1 %v1158_v30 }
  0x51   :  { %1002 = vmatpush3.bf16.msra.mxu0 %v1157_v29 }
  0x52   :  { %1031 = vmatprep.subr.bf16.mxu0 %v1160_v36 }
  0x53   :  { %1024 = vmatpush3.bf16.msra.mxu1 %v1159_v33 }
  0x54   :  { %531 = vmatmul.mubr.bf16.vlgmr.msra.gmra.mxu0 %v88_v35  ;;  %1073 = vmatprep.subr.bf16.mxu1 %v1311_v44 }
  0x55   :  { %1032 = vmatpush3.bf16.msra.mxu0 %v1161_v39  ;;  %610 = vmatprep.mubr.bf16.mxu0 %v93_v56 }
  0x56   :  { %571 = vmatmul.mubr.bf16.vlgmr.msra.gmra.mxu1 %v90_v41  ;;  %1033 = vmatprep.subr.bf16.mxu0 %v1162_v42  ;;  %v1192_v41 = vld [vmem:[#allocation8] sm:$0xff]  }
  0x57   :  { %1075 = vmatprep.mubr.msk.bf16.mxu1 %vm1312_vm0, %v1311_v44  ;;  %1074 = vmatpush3.bf16.msra.mxu1 %v1176_v53  ;;  %v969_v42 = vld [vmem:[%s1416_s4] ss:$0 sm:$0xff]  ;;  %s1313_s4 = smov [#allocation10]  }
  0x58   :  { %1079 = vmatprep.subr.bf16.mxu1 %v1311_v44 }
  0x59   :  { %1034 = vmatpush3.bf16.msra.mxu0 %v1163_v43 }
  0x5a   :  { %1035 = vmatprep.subr.bf16.mxu0 %v1164_v45 }
  0x5d   :  { %1036 = vmatpush3.bf16.msra.mxu0 %v1165_v46 }
  0x5e   :  { %1037 = vmatprep.subr.bf16.mxu0 %v1166_v47  ;;  %1076 = vmatmul.mubr.msk.bf16.vlgmr.msra.gmra.mxu1 %vm494_vm1, %v94_v58 }
  0x5f   :  { %1095 = vmatprep.mubr.msk.bf16.mxu1 %vm1312_vm0, %v1311_v44  ;;  %1080 = vmatpush3.bf16.msra.mxu1 %v1177_v0 }
  0x60   :  { %1081 = vmatprep.subr.bf16.mxu1 %v1311_v44 }
  0x61   :  { %1038 = vmatpush3.bf16.msra.mxu0 %v1167_v48 }
  0x62   :  { %1039 = vmatprep.subr.bf16.mxu0 %v1168_v49 }
  0x63   :  { %1082 = vmatpush3.bf16.msra.mxu1 %v1178_v1 }
  0x64   :  { %1083 = vmatprep.subr.bf16.mxu1 %v1311_v44 }
  0x65   :  { %1040 = vmatpush3.bf16.msra.mxu0 %v1169_v50 }
  0x66   :  { %1041 = vmatprep.subr.bf16.mxu0 %v1170_v51  ;;  %v885_v51 = vlaneseq }
  0x67   :  { %1084 = vmatpush3.bf16.msra.mxu1 %v1179_v2 }
  0x68   :  { %1085 = vmatprep.subr.bf16.mxu1 %v1311_v44 }
  0x69   :  { %1042 = vmatpush3.bf16.msra.mxu0 %v1171_v52  ;;  %v978_v52 = vld [vmem:[%s1418_s6] ss:$0 sm:$0xff]  ;;  %s907_s6 = sshll.u32 %s1313_s4, 4  ;;  %s908_s6 = int_to_ptr.vmem [resolvable:$true] %s907_s6 }
  0x6a   :  { %1043 = vmatprep.subr.bf16.mxu0 %v1172_v55  ;;  %s1277_s24 = scalar_lea.vmem %s908_s6, 128  ;;  %p1282_p7 = scmp.lt.s32.totalorder %s908_s6, %s908_s6 }
  0x6b   :  { %1086 = vmatpush3.bf16.msra.mxu1 %v1180_v3  ;;  %p1278_p6 = scmp.ne.s32.totalorder %s908_s6, %s1277_s24  ;;  %p1283_p8 = scmp.lt.s32.totalorder %s1277_s24, %s1277_s24 }
  0x6c   :  { %1087 = vmatprep.subr.bf16.mxu1 %v1311_v44 }
  0x6d   :  { %1044 = vmatpush3.bf16.msra.mxu0 %v1173_v59  ;;  %p1284_p9 = por %p1283_p8, %p1282_p7 }
  0x6e   :  { %1045 = vmatprep.subr.bf16.mxu0 %v1174_v60 }
  0x6f   :  { %1088 = vmatpush3.bf16.msra.mxu1 %v1181_v4  ;;  %p1285_p10 = pnand %p1284_p9, %p1278_p6 }
  0x70   :  { %1089 = vmatprep.subr.bf16.mxu1 %v1311_v44 }
  0x71   :  { %1046 = vmatpush3.bf16.msra.mxu0 %v1175_v61 }
  0x72   :  { %1099 = vmatprep.subr.bf16.mxu0 %v1311_v44 }
  0x73   :  { %1090 = vmatpush3.bf16.msra.mxu1 %v1182_v5 }
  0x74   :  { %611 = vmatmul.mubr.bf16.vlgmr.msra.gmra.mxu0 %v92_v63  ;;  %1091 = vmatprep.subr.bf16.mxu1 %v1311_v44 }
  0x75   :  { %1115 = vmatprep.mubr.msk.bf16.mxu0 %vm1312_vm0, %v1311_v44  ;;  %1100 = vmatpush3.bf16.msra.mxu0 %v1185_v8 }
  0x76   :  { %1101 = vmatprep.subr.bf16.mxu0 %v1311_v44 }
  0x77   :  { %1092 = vmatpush3.bf16.msra.mxu1 %v1183_v6 }
  0x78   :  { %1093 = vmatprep.subr.bf16.mxu1 %v1311_v44 }
  0x79   :  { %1102 = vmatpush3.bf16.msra.mxu0 %v1186_v9 }
  0x7a   :  { %1103 = vmatprep.subr.bf16.mxu0 %v1311_v44 }
  0x7b   :  { %1094 = vmatpush3.bf16.msra.mxu1 %v1184_v7 }
  0x7d   :  { %1104 = vmatpush3.bf16.msra.mxu0 %v1187_v10 }
  0x7e   :  { %1105 = vmatprep.subr.bf16.mxu0 %v1311_v44 }
  0x81   :  { %1106 = vmatpush3.bf16.msra.mxu0 %v1188_v11 }
  0x82   :  { %1107 = vmatprep.subr.bf16.mxu0 %v1311_v44 }
  0x85   :  { %1108 = vmatpush3.bf16.msra.mxu0 %v1189_v12 }
  0x86   :  { %1109 = vmatprep.subr.bf16.mxu0 %v1311_v44 }
  0x89   :  { %1110 = vmatpush3.bf16.msra.mxu0 %v1190_v13 }
  0x8a   :  { %1111 = vmatprep.subr.bf16.mxu0 %v1311_v44 }
  0x8d   :  { %1112 = vmatpush3.bf16.msra.mxu0 %v1191_v40 }
  0x8e   :  { %1113 = vmatprep.subr.bf16.mxu0 %v1311_v44  ;;  %v886_v44 = vand.u32 127, %v885_v51 }
  0x90   :  { %vm887_vm2 = vcmp.lt.s32.totalorder %v886_v44, 10 }
  0x91   :  { %1114 = vmatpush3.bf16.msra.mxu0 %v1192_v41 }
 0x114   :  { %v1003_v14 = vpop.f32.mrf.mxu0 }
 0x116   :  { %v1004_v15 = vpop.f32.mrf.mxu0  ;;  %v1025_v16 = vpop.f32.mrf.mxu1 }
 0x117   :  { %v1005_v26 = vadd.f32 %v1004_v15, %v1003_v14 }
 0x118   :  { %v1006_v17 = vpop.f32.mrf.mxu0  ;;  %v1026_v18 = vpop.f32.mrf.mxu1 }
 0x119   :  { %v533_v28 = vadd.f32 %v1005_v26, %v918_v27  ;;  %v1027_v29 = vadd.f32 %v1026_v18, %v1025_v16 }
 0x11a   :  { %v1007_v19 = vpop.f32.mrf.mxu0  ;;  %v1028_v20 = vpop.f32.mrf.mxu1 }
 0x11b   :  { %v573_v32 = vadd.f32 %v1027_v29, %v533_v28 }
 0x11c   :  { %v1029_v21 = vpop.f32.mrf.mxu1 }
 0x11e   :  { %v652_v22 = vpop.f32.mrf.mxu1 }
 0x120   :  { %v1077_v23 = vpop.f32.mrf.mxu1 }
 0x122   :  { %v655_v24 = vpop.f32.mrf.mxu1 }
 0x124   :  { %v1078_v25 = vpop.f32.mrf.mxu1 }
 0x134   :  { %v1047_v30 = vpop.f32.mrf.mxu0 }
 0x136   :  { %v1048_v31 = vpop.f32.mrf.mxu0 }
 0x137   :  { %v1049_v33 = vadd.f32 %v1048_v31, %v1047_v30 }
 0x138   :  { %v1050_v34 = vpop.f32.mrf.mxu0 }
 0x139   :  { %v613_v35 = vadd.f32 %v1049_v33, %v573_v32 }
 0x13a   :  { %v1051_v36 = vpop.f32.mrf.mxu0 }
 0x13b   :  { %v653_v37 = vadd.f32 %v652_v22, %v613_v35 }
 0x13d   :  { %v658_v38 = vmax.f32 %v653_v37, 0.0 }
 0x13f   :  { %v659_v39 = vpack.c.bf16 %v658_v38, %v658_v38 }
 0x141   :  { %1096 = vmatmul.mubr.bf16.vlgmr.msra.gmra.mxu1 %v659_v39 }
 0x201   :  { %v765_v43 = vpop.f32.mrf.mxu1 }
 0x202   :  { %v766_v45 = vadd.f32 %v969_v42, %v765_v43 }
 0x203   :  { %v1097_v46 = vpop.f32.mrf.mxu1 }
 0x204   :  { %v771_v47 = vmax.f32 %v766_v45, 0.0 }
 0x205   :  { %v768_v48 = vpop.f32.mrf.mxu1 }
 0x206   :  { %v772_v49 = vpack.c.bf16 %v771_v47, %v771_v47 }
 0x207   :  { %v1098_v50 = vpop.f32.mrf.mxu1 }
 0x208   :  { %1116 = vmatmul.mubr.bf16.vlgmr.msra.gmra.mxu0 %v772_v49 }
 0x2c8   :  { %v878_v53 = vpop.f32.mrf.mxu0 }
 0x2c9   :  { %v879_v54 = vadd.f32 %v978_v52, %v878_v53 }
 0x2ca   :  { %v1117_v55 = vpop.f32.mrf.mxu0 }
 0x2cb   :  { %v884_v56 = vmax.f32 %v879_v54, 0.0 }
 0x2cc   :  { %v881_v57 = vpop.f32.mrf.mxu0 }
 0x2cd   :  { %v888_v58 = vsel %vm887_vm2, %v884_v56, -inf }
 0x2ce   :  { %889 = vmax.xlane.f32.xlu0 %v888_v58  ;;  %v1118_v59 = vpop.f32.mrf.mxu0 }
 0x357   :  { %v890_v60 = vpop.xlane.xlu0 %889 }
 0x358   :  { %v891_v61 = vsub.f32 %v888_v58, %v890_v60 }
 0x35a   :  { %v892_v62 = vmul.f32 1.442695, %v891_v61 }
 0x35c   :  { %1193 = vpow2.f32 %v892_v62 }
 0x369   :  { %v1194_v63 = vpop.eup %1193 }
 0x36a   :  { %894 = vadd.xlane.f32.xlu0 %v1194_v63 }
 0x3f3   :  { %v895_v0 = vpop.xlane.xlu0 %894 }
 0x3f4   :  { %1195 = vlog2.f32 %v895_v0 }
 0x401   :  { %v1196_v1 = vpop.eup %1195 }
 0x402   :  { %v897_v2 = vmul.f32 0.6931472, %v1196_v1 }
 0x404   :  { %v898_v3 = vsub.f32 %v891_v61, %v897_v2 }
 0x406   :  { %v899_v4 = vsel %vm887_vm2, %v898_v3, 0.0 }
 0x407   :  { %900 = vst [vmem:[#allocation10] sm:$0xff] %v899_v4 }
 0x408   :  { %1288 = shalt.err (!%p1285_p10)
}
 0x409   :  { %910 = dma.vmem_to_hbm [thread:$0]  %s908_s6, 128, %s1419_s7, [#allocation4]  }
 0x40a   :  { %1303 = dma.done.wait [#allocation4], 128  }
 0x40b   :  { %1304 = vsyncadd [#allocation4], 4294967168 }
 0x40c   :  { %914 = vsyncpa [#allocation3], 1 }
 0x40d   :  { %915 = vsyncpa [#allocation6], 1 }
 0x40e   :  { %916 = vsyncpa [#allocation9], 1 }
 0x40f   :  { %917 = vsyncpa [#allocation4], 1 }

</bundles_post_ra>
